<compile_context>
chip_gen: v7x
topology: tpu7x:2x2x1
jax: 0.10.0
libtpu: 0.0.40
codegen_flags: <defaults>
</compile_context>

<pallas_src>
import math

import jax
import jax.numpy as jnp
from jax.experimental import pallas as pl
from jax.experimental.pallas import tpu as pltpu


FEATURE_DIM = 768
CLASS_NUM = 10


def _round_up(x, m):
    return ((x + m - 1) // m) * m


def embedding_fc_kernel(x_ref, fcw_ref, fcb_ref, f1w_ref, f1b_ref,
                        f2w_ref, f2b_ref, emb_ref, packed_ref):
    # L2 normalize along the feature axis.
    # x / max(||x||, 1e-12) == x * rsqrt(max(||x||^2, 1e-24))  (sqrt is monotone).
    # Tail-block garbage rows stay row-local (per-row norm, per-row matmul rows) and
    # their writes are dropped by Pallas, so any inf/nan there is harmless.
    x = x_ref[...].astype(jnp.float32)
    sq = jnp.sum(x * x, axis=1, keepdims=True)
    inv = jax.lax.rsqrt(jnp.maximum(sq, 1e-24))
    emb_ref[...] = (x * inv).astype(emb_ref.dtype)

    def dot(a, b):
        # Pin single-pass bf16-in / f32-acc regardless of ambient matmul precision.
        return jnp.dot(a, b, preferred_element_type=jnp.float32,
                       precision=jax.lax.Precision.DEFAULT)

    # fc: [TB,768] @ [768,PAD_C] + [1,PAD_C]. Padded columns of W/b are zero, so
    # cols [0, C) are the real logits and cols [C, PAD_C) stay exactly zero.
    out = dot(emb_ref[...], fcw_ref[...]) + fcb_ref[...]

    # focal head: relu(focal1(out)) -> focal2. focal2's padded weight routes the
    # scalar focal value into column C of the lane-dense [TB, PAD_C] slab.
    h = jnp.maximum(dot(out, f1w_ref[...]) + f1b_ref[...], 0.0)
    focal = dot(h, f2w_ref[...]) + f2b_ref[...]

    # Single lane-dense store: cols [0,C) = logits, col C = focal, rest zero.
    packed_ref[...] = (out + focal).astype(packed_ref.dtype)


def prepare_padded_params(params):
    """Build the zero-padded, lane-dense weight slabs ONCE (not per forward call)."""
    C = params["fc_w"].shape[1]
    pad_c = _round_up(C + 1, 128)  # logits in cols [0,C), focal in col C
    f32 = jnp.float32
    fc_w = jnp.zeros((FEATURE_DIM, pad_c), f32).at[:, :C].set(params["fc_w"])
    fc_b = jnp.zeros((1, pad_c), f32).at[:, :C].set(params["fc_b"].reshape(1, C))
    f1_w = jnp.zeros((pad_c, pad_c), f32).at[:C, :C].set(params["focal1_w"])
    f1_b = jnp.zeros((1, pad_c), f32).at[:, :C].set(params["focal1_b"].reshape(1, C))
    f2_w = jnp.zeros((pad_c, pad_c), f32).at[:C, C].set(params["focal2_w"].reshape(C))
    f2_b = jnp.zeros((1, pad_c), f32).at[0, C].set(params["focal2_b"].reshape(()))
    return {"class_num": C, "pad_c": pad_c,
            "fc_w": fc_w, "fc_b": fc_b,
            "f1_w": f1_w, "f1_b": f1_b,
            "f2_w": f2_w, "f2_b": f2_b}


def embedding_fc_forward(x, padded, *, block_b=512, vmem_limit_bytes=None):
    """x: [B, 768] float32. padded: output of prepare_padded_params()."""
    B, D = x.shape
    assert D == FEATURE_DIM
    C = int(padded["class_num"])
    pad_c = int(padded["pad_c"])

    # Batch tile: multiple of 8 (f32 sublane). No padding of B: Pallas handles the
    # ragged last block (OOB reads are junk rows, OOB writes are dropped).
    tb = min(block_b, _round_up(B, 8))
    grid = (pl.cdiv(B, tb),)

    if vmem_limit_bytes is None:
        weight_bytes = 4 * (FEATURE_DIM * pad_c + 2 * pad_c * pad_c + 3 * pad_c)
        footprint = (2 * 2 * tb * FEATURE_DIM * 4   # x + emb tiles, double buffered
                     + 2 * tb * pad_c * 4           # packed tile, double buffered
                     + 2 * weight_bytes)            # weights/biases, double buffered
        # Right-sized with headroom (stays well inside v7x's 64 MiB per-TC VMEM).
        vmem_limit_bytes = min(int(footprint * 1.5) + (8 << 20), 100 << 20)

    def row_spec(shape):
        return pl.BlockSpec(shape, lambda i: (i, 0))

    def pinned_spec(shape):
        return pl.BlockSpec(shape, lambda i: (0, 0))

    flops = 2 * B * (FEATURE_DIM * pad_c + 2 * pad_c * pad_c) + 3 * B * FEATURE_DIM
    bytes_accessed = 4 * (2 * B * FEATURE_DIM + B * pad_c
                          + FEATURE_DIM * pad_c + 2 * pad_c * pad_c + 3 * pad_c)

    emb, packed = pl.pallas_call(
        embedding_fc_kernel,
        out_shape=(
            jax.ShapeDtypeStruct((B, FEATURE_DIM), jnp.float32),  # normalized emb
            jax.ShapeDtypeStruct((B, pad_c), jnp.float32),        # logits|focal slab
        ),
        grid=grid,
        in_specs=[
            row_spec((tb, FEATURE_DIM)),          # x tile (streams over batch)
            pinned_spec((FEATURE_DIM, pad_c)),    # fc_w (grid-invariant)
            pinned_spec((1, pad_c)),              # fc_b
            pinned_spec((pad_c, pad_c)),          # focal1_w
            pinned_spec((1, pad_c)),              # focal1_b
            pinned_spec((pad_c, pad_c)),          # focal2_w (value routed to col C)
            pinned_spec((1, pad_c)),              # focal2_b
        ],
        out_specs=[
            row_spec((tb, FEATURE_DIM)),
            row_spec((tb, pad_c)),
        ],
        compiler_params=pltpu.CompilerParams(
            dimension_semantics=("parallel",),
            vmem_limit_bytes=vmem_limit_bytes,
        ),
        cost_estimate=pl.CostEstimate(
            flops=flops, transcendentals=B, bytes_accessed=bytes_accessed),
    )(x, padded["fc_w"], padded["fc_b"], padded["f1_w"], padded["f1_b"],
      padded["f2_w"], padded["f2_b"])

    outputs = packed[:, :C]
    focal = packed[:, C:C + 1]
    return emb, outputs, focal


def kaiming_normal(key, fan_in, fan_out):
    # torch.nn.init.kaiming_normal_ default: mode='fan_in', a=0 -> std = sqrt(2/fan_in)
    std = math.sqrt(2.0 / fan_in)
    # stored pre-transposed as [in, out] vs. PyTorch's [out, in]
    return std * jax.random.normal(key, (fan_in, fan_out), dtype=jnp.float32)


def init_params(key, class_num=CLASS_NUM):
    k_fc, k_f1, k_f2 = jax.random.split(key, 3)
    return {
        # Linear biases initialized to zero (init_weights: nn.init.zeros_)
        "fc_w": kaiming_normal(k_fc, FEATURE_DIM, class_num),
        "fc_b": jnp.zeros((1, class_num), jnp.float32),
        "focal1_w": kaiming_normal(k_f1, class_num, class_num),
        "focal1_b": jnp.zeros((1, class_num), jnp.float32),
        "focal2_w": kaiming_normal(k_f2, class_num, 1),
        "focal2_b": jnp.zeros((1, 1), jnp.float32),
        # TODO(synk): gvbg Linear is initialized in the module but never used in
        # forward(); intentionally omitted from the kernel.
    }


def _reference_forward(x, p):
    emb = x / jnp.maximum(jnp.linalg.norm(x, axis=1, keepdims=True), 1e-12)
    out = emb @ p["fc_w"] + p["fc_b"]
    focal = jnp.maximum(out @ p["focal1_w"] + p["focal1_b"], 0.0) \
        @ p["focal2_w"] + p["focal2_b"]
    return emb, out, focal


def _check(B, x, params, padded, atol_emb=1e-5, atol=1e-4):
    emb, outputs, focal = embedding_fc_forward(x, padded)
    jax.block_until_ready((emb, outputs, focal))
    emb_r, out_r, focal_r = _reference_forward(x, params)
    C = params["fc_w"].shape[1]
    assert emb.shape == (B, FEATURE_DIM)
    assert outputs.shape == (B, C)
    assert focal.shape == (B, 1)
    assert jnp.allclose(emb, emb_r, atol=atol_emb)
    assert jnp.allclose(outputs, out_r, atol=atol)
    assert jnp.allclose(focal, focal_r, atol=atol)


if __name__ == "__main__":
    key = jax.random.PRNGKey(0)
    k_param, k_x, k_x2, k_x3 = jax.random.split(key, 4)
    params = init_params(k_param)
    padded = prepare_padded_params(params)   # padded weights built once, reused

    # small batch, matches the module's 768-dim embedding input
    B = 8
    x = jax.random.normal(k_x, (B, FEATURE_DIM), dtype=jnp.float32)
    _check(B, x, params, padded)

    # ragged batch (B not a multiple of the sublane/tile) — no host-side padding now
    B2 = 13
    x2 = jax.random.normal(k_x2, (B2, FEATURE_DIM), dtype=jnp.float32)
    _check(B2, x2, params, padded)

    # multi-step grid with a partial tail block (B > block_b, not a multiple of it)
    B3 = 600
    x3 = jax.random.normal(k_x3, (B3, FEATURE_DIM), dtype=jnp.float32)
    _check(B3, x3, params, padded)

    print("KERNEL_OK")
</pallas_src>

<mosaic_0001>
module attributes {stable_mosaic.version = 11 : i64} {
  func.func @embedding_fc_kernel(%arg0: i32, %arg1: memref<8x768xf32, #tpu.memory_space<vmem>>, %arg2: memref<768x128xf32, #tpu.memory_space<vmem>>, %arg3: memref<1x128xf32, #tpu.memory_space<vmem>>, %arg4: memref<128x128xf32, #tpu.memory_space<vmem>>, %arg5: memref<1x128xf32, #tpu.memory_space<vmem>>, %arg6: memref<128x128xf32, #tpu.memory_space<vmem>>, %arg7: memref<1x128xf32, #tpu.memory_space<vmem>>, %arg8: memref<8x768xf32, #tpu.memory_space<vmem>>, %arg9: memref<8x128xf32, #tpu.memory_space<vmem>>) attributes {dimension_semantics = [#tpu.dimension_semantics<parallel>], iteration_bounds = array<i64: 1>, scalar_prefetch = 0 : i64, scratch_operands = 0 : i64, tpu.core_type = #tpu.core_type<tc>, window_params = [{transform_indices = @transform_0, window_bounds = array<i64: 8, 768>}, {pipeline_mode = #tpu.pipeline_mode<synchronous>, transform_indices = @transform_1, window_bounds = array<i64: 768, 128>}, {pipeline_mode = #tpu.pipeline_mode<synchronous>, transform_indices = @transform_2, window_bounds = array<i64: 1, 128>}, {pipeline_mode = #tpu.pipeline_mode<synchronous>, transform_indices = @transform_3, window_bounds = array<i64: 128, 128>}, {pipeline_mode = #tpu.pipeline_mode<synchronous>, transform_indices = @transform_4, window_bounds = array<i64: 1, 128>}, {pipeline_mode = #tpu.pipeline_mode<synchronous>, transform_indices = @transform_5, window_bounds = array<i64: 128, 128>}, {pipeline_mode = #tpu.pipeline_mode<synchronous>, transform_indices = @transform_6, window_bounds = array<i64: 1, 128>}, {transform_indices = @transform_7, window_bounds = array<i64: 8, 768>}, {transform_indices = @transform_8, window_bounds = array<i64: 8, 128>}]} {
    %c0 = arith.constant 0 : index
    %c0_0 = arith.constant 0 : index
    %0 = vector.load %arg1[%c0, %c0_0] : memref<8x768xf32, #tpu.memory_space<vmem>>, vector<8x768xf32>
    %1 = arith.mulf %0, %0 : vector<8x768xf32>
    %cst = arith.constant dense<0.000000e+00> : vector<8xf32>
    %2 = vector.multi_reduction <add>, %1, %cst [1] : vector<8x768xf32> to vector<8xf32>
    %3 = vector.shape_cast %2 : vector<8xf32> to vector<8x1xf32>
    %cst_1 = arith.constant 1.000000e-24 : f32
    %4 = vector.broadcast %cst_1 : f32 to vector<8x1xf32>
    %5 = arith.maximumf %3, %4 : vector<8x1xf32>
    %6 = math.rsqrt %5 : vector<8x1xf32>
    %7 = vector.broadcast %6 : vector<8x1xf32> to vector<8x768xf32>
    %8 = arith.mulf %0, %7 : vector<8x768xf32>
    %c0_2 = arith.constant 0 : index
    %c0_3 = arith.constant 0 : index
    %9 = vector.load %arg8[%c0_2, %c0_3] : memref<8x768xf32, #tpu.memory_space<vmem>>, vector<8x768xf32>
    tpu.vector_store %arg8[%c0_2, %c0_3], %8 {strides = array<i32>} : memref<8x768xf32, #tpu.memory_space<vmem>>, vector<8x768xf32>,
    %c0_4 = arith.constant 0 : index
    %c0_5 = arith.constant 0 : index
    %10 = vector.load %arg8[%c0_4, %c0_5] : memref<8x768xf32, #tpu.memory_space<vmem>>, vector<8x768xf32>
    %c0_6 = arith.constant 0 : index
    %c0_7 = arith.constant 0 : index
    %11 = vector.load %arg2[%c0_6, %c0_7] : memref<768x128xf32, #tpu.memory_space<vmem>>, vector<768x128xf32>
    %cst_8 = arith.constant dense<0.000000e+00> : vector<8x128xf32>
    %12 = tpu.matmul %10, %11, %cst_8 {dimension_numbers = #tpu.dot_dimension_numbers<[1], [0], [0], [1], [0, 0, 1, 1], [], []>} : vector<8x768xf32>, vector<768x128xf32>, vector<8x128xf32> -> vector<8x128xf32>
    %c0_9 = arith.constant 0 : index
    %c0_10 = arith.constant 0 : index
    %13 = vector.load %arg3[%c0_9, %c0_10] : memref<1x128xf32, #tpu.memory_space<vmem>>, vector<1x128xf32>
    %14 = vector.broadcast %13 : vector<1x128xf32> to vector<8x128xf32>
    %15 = arith.addf %12, %14 : vector<8x128xf32>
    %c0_11 = arith.constant 0 : index
    %c0_12 = arith.constant 0 : index
    %16 = vector.load %arg4[%c0_11, %c0_12] : memref<128x128xf32, #tpu.memory_space<vmem>>, vector<128x128xf32>
    %cst_13 = arith.constant dense<0.000000e+00> : vector<8x128xf32>
    %17 = tpu.matmul %15, %16, %cst_13 {dimension_numbers = #tpu.dot_dimension_numbers<[1], [0], [0], [1], [0, 0, 1, 1], [], []>} : vector<8x128xf32>, vector<128x128xf32>, vector<8x128xf32> -> vector<8x128xf32>
    %c0_14 = arith.constant 0 : index
    %c0_15 = arith.constant 0 : index
    %18 = vector.load %arg5[%c0_14, %c0_15] : memref<1x128xf32, #tpu.memory_space<vmem>>, vector<1x128xf32>
    %19 = vector.broadcast %18 : vector<1x128xf32> to vector<8x128xf32>
    %20 = arith.addf %17, %19 : vector<8x128xf32>
    %cst_16 = arith.constant 0.000000e+00 : f32
    %21 = vector.broadcast %cst_16 : f32 to vector<8x128xf32>
    %22 = arith.maximumf %20, %21 : vector<8x128xf32>
    %c0_17 = arith.constant 0 : index
    %c0_18 = arith.constant 0 : index
    %23 = vector.load %arg6[%c0_17, %c0_18] : memref<128x128xf32, #tpu.memory_space<vmem>>, vector<128x128xf32>
    %cst_19 = arith.constant dense<0.000000e+00> : vector<8x128xf32>
    %24 = tpu.matmul %22, %23, %cst_19 {dimension_numbers = #tpu.dot_dimension_numbers<[1], [0], [0], [1], [0, 0, 1, 1], [], []>} : vector<8x128xf32>, vector<128x128xf32>, vector<8x128xf32> -> vector<8x128xf32>
    %c0_20 = arith.constant 0 : index
    %c0_21 = arith.constant 0 : index
    %25 = vector.load %arg7[%c0_20, %c0_21] : memref<1x128xf32, #tpu.memory_space<vmem>>, vector<1x128xf32>
    %26 = vector.broadcast %25 : vector<1x128xf32> to vector<8x128xf32>
    %27 = arith.addf %24, %26 : vector<8x128xf32>
    %28 = arith.addf %15, %27 : vector<8x128xf32>
    %c0_22 = arith.constant 0 : index
    %c0_23 = arith.constant 0 : index
    %29 = vector.load %arg9[%c0_22, %c0_23] : memref<8x128xf32, #tpu.memory_space<vmem>>, vector<8x128xf32>
    tpu.vector_store %arg9[%c0_22, %c0_23], %28 {strides = array<i32>} : memref<8x128xf32, #tpu.memory_space<vmem>>, vector<8x128xf32>,
    return
  }
  func.func @transform_0(%arg0: i32) -> (i32, i32) {
    %c0_i32 = arith.constant 0 : i32
    %c0_i32_0 = arith.constant 0 : i32
    return %arg0, %c0_i32 : i32, i32
  }
  func.func @transform_1(%arg0: i32) -> (i32, i32) {
    %c0_i32 = arith.constant 0 : i32
    %c0_i32_0 = arith.constant 0 : i32
    %c0_i32_1 = arith.constant 0 : i32
    return %c0_i32, %c0_i32_0 : i32, i32
  }
  func.func @transform_2(%arg0: i32) -> (i32, i32) {
    %c0_i32 = arith.constant 0 : i32
    %c0_i32_0 = arith.constant 0 : i32
    %c0_i32_1 = arith.constant 0 : i32
    return %c0_i32, %c0_i32_0 : i32, i32
  }
  func.func @transform_3(%arg0: i32) -> (i32, i32) {
    %c0_i32 = arith.constant 0 : i32
    %c0_i32_0 = arith.constant 0 : i32
    %c0_i32_1 = arith.constant 0 : i32
    return %c0_i32, %c0_i32_0 : i32, i32
  }
  func.func @transform_4(%arg0: i32) -> (i32, i32) {
    %c0_i32 = arith.constant 0 : i32
    %c0_i32_0 = arith.constant 0 : i32
    %c0_i32_1 = arith.constant 0 : i32
    return %c0_i32, %c0_i32_0 : i32, i32
  }
  func.func @transform_5(%arg0: i32) -> (i32, i32) {
    %c0_i32 = arith.constant 0 : i32
    %c0_i32_0 = arith.constant 0 : i32
    %c0_i32_1 = arith.constant 0 : i32
    return %c0_i32, %c0_i32_0 : i32, i32
  }
  func.func @transform_6(%arg0: i32) -> (i32, i32) {
    %c0_i32 = arith.constant 0 : i32
    %c0_i32_0 = arith.constant 0 : i32
    %c0_i32_1 = arith.constant 0 : i32
    return %c0_i32, %c0_i32_0 : i32, i32
  }
  func.func @transform_7(%arg0: i32) -> (i32, i32) {
    %c0_i32 = arith.constant 0 : i32
    %c0_i32_0 = arith.constant 0 : i32
    return %arg0, %c0_i32 : i32, i32
  }
  func.func @transform_8(%arg0: i32) -> (i32, i32) {
    %c0_i32 = arith.constant 0 : i32
    %c0_i32_0 = arith.constant 0 : i32
    return %arg0, %c0_i32 : i32, i32
  }
}

</mosaic_0001>

<bundles_post_ra>
// kernel: tpu_custom_call.1
= control target key start
LH: loop header
LB: loop body
LE: loop exit
PB: predicated region body
PF: predicated region fallthrough
CT: control target
= control target key end

     0   :  { %14 = vsyncpa [#allocation3], 0  ;;  %s1362_s0 = inlined_call_operand.hbm [shape: f32[8,768], index: 0, kind: input, shape index: {}]   ;;  %s1363_s1 = inlined_call_operand.hbm [shape: f32[768,128], index: 1, kind: input, shape index: {}]   ;;  %s1364_s2 = inlined_call_operand.vmem [shape: f32[1,128], index: 2, kind: input, shape index: {}]   ;;  %s1365_s3 = inlined_call_operand.hbm [shape: f32[128,128], index: 3, kind: input, shape index: {}]   ;;  %s1366_s4 = inlined_call_operand.vmem [shape: f32[1,128], index: 4, kind: input, shape index: {}]   ;;  %s1367_s5 = inlined_call_operand.hbm [shape: f32[128,128], index: 5, kind: input, shape index: {}]   ;;  %s1368_s6 = inlined_call_operand.vmem [shape: f32[1,128], index: 6, kind: input, shape index: {}]   ;;  %s1369_s7 = inlined_call_operand.hbm [shape: f32[8,768], index: 7, kind: output, shape index: {0}]   ;;  %s1370_s8 = inlined_call_operand.hbm [shape: f32[8,128], index: 8, kind: output, shape index: {1}]  }
   0x1   :  { %15 = vsyncpa [#allocation6], 0 }
   0x2   :  { %16 = vsyncpa [#allocation9], 0 }
   0x3   :  { %17 = vsyncpa [#allocation4], 0 }
   0x4   :  { %18 = vsyncpa [#allocation12], 0  ;;  %s1166_s27 = smov [#allocation5]   ;;  %s1024_s9 = scalar_lea.hbm %s1363_s1, 12288 }
   0x5   :  { %s34_s28 = sshll.u32 %s1166_s27, 4  ;;  %p1025_p0 = scmp.ne.s32.totalorder %s1363_s1, %s1024_s9  ;;  %s35_s28 = int_to_ptr.vmem [resolvable:$true] %s34_s28 }
   0x6   :  { %p1028_p1 = scmp.lt.u32.totalorder %s1024_s9, %s1363_s1 }
   0x8   :  { %p1030_p2 = pnand %p1028_p1, %p1025_p0 }
   0xa   :  { %1033 = shalt.err (!%p1030_p2)
}
   0xb   :  { %s1034_s14 = scalar_lea.vmem %s35_s28, 12288  ;;  %p1039_p4 = scmp.lt.s32.totalorder %s35_s28, %s35_s28 }
   0xc   :  { %p1035_p3 = scmp.ne.s32.totalorder %s35_s28, %s1034_s14  ;;  %p1040_p5 = scmp.lt.s32.totalorder %s1034_s14, %s1034_s14 }
   0xe   :  { %p1041_p6 = por %p1040_p5, %p1039_p4 }
  0x10   :  { %p1042_p7 = pnand %p1041_p6, %p1035_p3 }
  0x12   :  { %1045 = shalt.err (!%p1042_p7)
}
  0x13   :  { %s1167_s15 = smov 128   ;;  %s1168_s16 = smov 8  }
  0x14   :  { %40 = dma.hbm_to_vmem [thread:$0]  %s1363_s1, 12288, %s35_s28, [#allocation6], %s1167_s15, %s1167_s15, %s1168_s16  }
  0x15   :  { %s1169_s19 = smov [#allocation2]   ;;  %s1170_s21 = smov [#allocation7]  }
  0x16   :  { %s25_s20 = sshll.u32 %s1169_s19, 4  ;;  %s48_s22 = sshll.u32 %s1170_s21, 4  ;;  %s26_s20 = int_to_ptr.vmem [resolvable:$true] %s25_s20  ;;  %s49_s22 = int_to_ptr.vmem [resolvable:$true] %s48_s22 }
  0x17   :  { %s1046_s25 = scalar_lea.hbm %s1362_s0, 768 }
  0x18   :  { %p1047_p8 = scmp.ne.s32.totalorder %s1362_s0, %s1046_s25  ;;  %p1050_p9 = scmp.lt.u32.totalorder %s1046_s25, %s1362_s0 }
  0x1a   :  { %p1052_p10 = pnand %p1050_p9, %p1047_p8 }
  0x1c   :  { %1055 = shalt.err (!%p1052_p10)
}
  0x1d   :  { %s1056_s1 = scalar_lea.vmem %s26_s20, 768  ;;  %p1061_p12 = scmp.lt.s32.totalorder %s26_s20, %s26_s20 }
  0x1e   :  { %p1057_p11 = scmp.ne.s32.totalorder %s26_s20, %s1056_s1  ;;  %p1062_p13 = scmp.lt.s32.totalorder %s1056_s1, %s1056_s1 }
  0x20   :  { %p1063_p0 = por %p1062_p13, %p1061_p12 }
  0x22   :  { %p1064_p1 = pnand %p1063_p0, %p1057_p11 }
  0x24   :  { %1067 = shalt.err (!%p1064_p1)
}
  0x25   :  { %28 = dma.hbm_to_vmem [thread:$0]  %s1362_s0, 768, %s26_s20, [#allocation3]  }
  0x26   :  { %s1068_s12 = scalar_lea.hbm %s1365_s3, 2048 }
  0x27   :  { %p1069_p2 = scmp.ne.s32.totalorder %s1365_s3, %s1068_s12  ;;  %p1072_p3 = scmp.lt.u32.totalorder %s1068_s12, %s1365_s3 }
  0x29   :  { %p1074_p4 = pnand %p1072_p3, %p1069_p2 }
  0x2b   :  { %1077 = shalt.err (!%p1074_p4)
}
  0x2c   :  { %s1078_s19 = scalar_lea.vmem %s49_s22, 2048  ;;  %p1083_p6 = scmp.lt.s32.totalorder %s49_s22, %s49_s22 }
  0x2d   :  { %p1079_p5 = scmp.ne.s32.totalorder %s49_s22, %s1078_s19  ;;  %p1084_p7 = scmp.lt.s32.totalorder %s1078_s19, %s1078_s19 }
  0x2f   :  { %p1085_p8 = por %p1084_p7, %p1083_p6 }
  0x31   :  { %p1086_p9 = pnand %p1085_p8, %p1079_p5 }
  0x33   :  { %1089 = shalt.err (!%p1086_p9)
}
  0x34   :  { %54 = dma.hbm_to_vmem [thread:$0]  %s1365_s3, 2048, %s49_s22, [#allocation6], %s1167_s15, %s1167_s15, %s1168_s16  }
  0x35   :  { %s1171_s21 = smov [#allocation8]   ;;  %s1090_s26 = scalar_lea.hbm %s1367_s5, 2048 }
  0x36   :  { %s62_s23 = sshll.u32 %s1171_s21, 4  ;;  %p1091_p10 = scmp.ne.s32.totalorder %s1367_s5, %s1090_s26  ;;  %s63_s23 = int_to_ptr.vmem [resolvable:$true] %s62_s23 }
  0x37   :  { %p1094_p11 = scmp.lt.u32.totalorder %s1090_s26, %s1367_s5 }
  0x39   :  { %p1096_p12 = pnand %p1094_p11, %p1091_p10 }
  0x3b   :  { %1099 = shalt.err (!%p1096_p12)
}
  0x3c   :  { %s1100_s28 = scalar_lea.vmem %s63_s23, 2048  ;;  %p1105_p0 = scmp.lt.s32.totalorder %s63_s23, %s63_s23 }
  0x3d   :  { %p1101_p13 = scmp.ne.s32.totalorder %s63_s23, %s1100_s28  ;;  %p1106_p1 = scmp.lt.s32.totalorder %s1100_s28, %s1100_s28 }
  0x3f   :  { %p1107_p2 = por %p1106_p1, %p1105_p0 }
  0x41   :  { %p1108_p3 = pnand %p1107_p2, %p1101_p13 }
  0x43   :  { %1111 = shalt.err (!%p1108_p3)
}
  0x44   :  { %68 = dma.hbm_to_vmem [thread:$0]  %s1367_s5, 2048, %s63_s23, [#allocation9], %s1167_s15, %s1167_s15, %s1168_s16  }
  0x45   :  { %1156 = dma.done.wait [#allocation3], 768  }
  0x46   :  { %1157 = vsyncadd [#allocation3], 4294966528 }
  0x47   :  { %1158 = dma.done.wait [#allocation6], 14336  }
  0x48   :  { %1159 = vsyncadd [#allocation6], 4294952960 }
  0x49   :  { %1160 = dma.done.wait [#allocation9], 2048  }
  0x4a   :  { %1161 = vsyncadd [#allocation9], 4294965248  ;;  %v1279_v0 = vld [vmem:[#allocation2] sm:$0xff]  ;;  %v1281_v1 = vld [vmem:[#allocation2 + $0x8] sm:$0xff]  ;;  %vm1173_vm0 = vmmov 0  }
  0x4b   :  { %v1283_v2 = vld [vmem:[#allocation2 + $0x10] sm:$0xff]  ;;  %v1285_v3 = vld [vmem:[#allocation2 + $0x18] sm:$0xff]  ;;  %v1287_v4 = vld [vmem:[#allocation2 + $0x20] sm:$0xff]  ;;  %v89_v5 = vmul.f32 %v1279_v0, %v1279_v0  ;;  %v90_v6 = vmul.f32 %v1281_v1, %v1281_v1 }
  0x4c   :  { %v91_v7 = vmul.f32 %v1283_v2, %v1283_v2  ;;  %v1295_v8 = vld [vmem:[#allocation2 + $0x28] sm:$0xff]  ;;  %v138_v9 = vld [vmem:[#allocation5 + $0x80] sm:$0xff]  ;;  %v139_v10 = vld [vmem:[#allocation5 + $0x88] sm:$0xff]  ;;  %v92_v12 = vmul.f32 %v1285_v3, %v1285_v3  ;;  %v93_v23 = vmul.f32 %v1287_v4, %v1287_v4 }
  0x4d   :  { %v122_v11 = vld [vmem:[#allocation5] sm:$0xff]  ;;  %v95_v13 = vadd.f32 %v90_v6, %v89_v5  ;;  %v867_v14 = vpack.c.bf16 %v139_v10, %v138_v9  ;;  %v123_v15 = vld [vmem:[#allocation5 + $0x8] sm:$0xff]  ;;  %v140_v22 = vld [vmem:[#allocation5 + $0x90] sm:$0xff]  ;;  %v94_v34 = vmul.f32 %v1295_v8, %v1295_v8 }
  0x4e   :  { %v170_v16 = vld [vmem:[#allocation5 + $0x180] sm:$0xff]  ;;  %v171_v17 = vld [vmem:[#allocation5 + $0x188] sm:$0xff]  ;;  %v869_v18 = vpack.c.bf16 %v123_v15, %v122_v11  ;;  %v141_v26 = vld [vmem:[#allocation5 + $0x98] sm:$0xff] }
  0x4f   :  { %v899_v19 = vpack.c.bf16 %v171_v17, %v170_v16  ;;  %v154_v20 = vld [vmem:[#allocation5 + $0x100] sm:$0xff]  ;;  %v155_v21 = vld [vmem:[#allocation5 + $0x108] sm:$0xff]  ;;  %v96_v24 = vadd.f32 %v95_v13, %v91_v7  ;;  %868 = vmatprep.subr.bf16.mxu0 %v867_v14  ;;  %v124_v27 = vld [vmem:[#allocation5 + $0x10] sm:$0xff]  ;;  %v871_v29 = vpack.c.bf16 %v141_v26, %v140_v22 }
  0x50   :  { %v901_v25 = vpack.c.bf16 %v155_v21, %v154_v20  ;;  %v125_v28 = vld [vmem:[#allocation5 + $0x18] sm:$0xff]  ;;  %870 = vmatpush3.bf16.msra.mxu0 %v869_v18  ;;  %v172_v31 = vld [vmem:[#allocation5 + $0x190] sm:$0xff]  ;;  %v142_v41 = vld [vmem:[#allocation5 + $0xa0] sm:$0xff] }
  0x51   :  { %900 = vmatprep.subr.bf16.mxu1 %v899_v19  ;;  %v873_v30 = vpack.c.bf16 %v125_v28, %v124_v27  ;;  %v173_v32 = vld [vmem:[#allocation5 + $0x198] sm:$0xff]  ;;  %v156_v33 = vld [vmem:[#allocation5 + $0x110] sm:$0xff]  ;;  %v97_v35 = vadd.f32 %v96_v24, %v92_v12  ;;  %872 = vmatprep.subr.bf16.mxu0 %v871_v29  ;;  %v143_v42 = vld [vmem:[#allocation5 + $0xa8] sm:$0xff] }
  0x52   :  { %902 = vmatpush3.bf16.msra.mxu1 %v901_v25  ;;  %v903_v36 = vpack.c.bf16 %v173_v32, %v172_v31  ;;  %v157_v37 = vld [vmem:[#allocation5 + $0x118] sm:$0xff]  ;;  %v875_v43 = vpack.c.bf16 %v143_v42, %v142_v41  ;;  %v126_v44 = vld [vmem:[#allocation5 + $0x20] sm:$0xff]  ;;  %v127_v45 = vld [vmem:[#allocation5 + $0x28] sm:$0xff] }
  0x53   :  { %v905_v38 = vpack.c.bf16 %v157_v37, %v156_v33  ;;  %v98_v39 = vadd.f32 %v97_v35, %v93_v23  ;;  %v174_v46 = vld [vmem:[#allocation5 + $0x1a0] sm:$0xff]  ;;  %v877_v47 = vpack.c.bf16 %v127_v45, %v126_v44  ;;  %v175_v48 = vld [vmem:[#allocation5 + $0x1a8] sm:$0xff]  ;;  %v144_v53 = vld [vmem:[#allocation5 + $0xb0] sm:$0xff] }
  0x54   :  { %904 = vmatprep.subr.bf16.mxu1 %v903_v36  ;;  %874 = vmatpush3.bf16.msra.mxu0 %v873_v30  ;;  %v158_v49 = vld [vmem:[#allocation5 + $0x120] sm:$0xff]  ;;  %v159_v50 = vld [vmem:[#allocation5 + $0x128] sm:$0xff]  ;;  %v907_v51 = vpack.c.bf16 %v175_v48, %v174_v46  ;;  %v145_v54 = vld [vmem:[#allocation5 + $0xb8] sm:$0xff] }
  0x55   :  { %v99_v40 = vadd.f32 %v98_v39, %v94_v34  ;;  %876 = vmatprep.subr.bf16.mxu0 %v875_v43  ;;  %v909_v52 = vpack.c.bf16 %v159_v50, %v158_v49  ;;  %v879_v55 = vpack.c.bf16 %v145_v54, %v144_v53  ;;  %v128_v56 = vld [vmem:[#allocation5 + $0x30] sm:$0xff]  ;;  %v129_v57 = vld [vmem:[#allocation5 + $0x38] sm:$0xff]  ;;  %v146_v6 = vld [vmem:[#allocation5 + $0xc0] sm:$0xff] }
  0x56   :  { %906 = vmatpush3.bf16.msra.mxu1 %v905_v38  ;;  %v176_v58 = vld [vmem:[#allocation5 + $0x1b0] sm:$0xff]  ;;  %v881_v59 = vpack.c.bf16 %v129_v57, %v128_v56  ;;  %v177_v60 = vld [vmem:[#allocation5 + $0x1b8] sm:$0xff]  ;;  %v147_v7 = vld [vmem:[#allocation5 + $0xc8] sm:$0xff] }
  0x57   :  { %100 = vadd.xlane.f32.xlu0 %v99_v40  ;;  %908 = vmatprep.subr.bf16.mxu1 %v907_v51  ;;  %v160_v61 = vld [vmem:[#allocation5 + $0x130] sm:$0xff]  ;;  %v161_v62 = vld [vmem:[#allocation5 + $0x138] sm:$0xff]  ;;  %v911_v63 = vpack.c.bf16 %v177_v60, %v176_v58  ;;  %v883_v9 = vpack.c.bf16 %v147_v7, %v146_v6  ;;  %v130_v10 = vld [vmem:[#allocation5 + $0x40] sm:$0xff] }
  0x58   :  { %878 = vmatpush3.bf16.msra.mxu0 %v877_v47  ;;  %v913_v5 = vpack.c.bf16 %v161_v62, %v160_v61  ;;  %v131_v11 = vld [vmem:[#allocation5 + $0x48] sm:$0xff]  ;;  %v178_v12 = vld [vmem:[#allocation5 + $0x1c0] sm:$0xff]  ;;  %v148_v19 = vld [vmem:[#allocation5 + $0xd0] sm:$0xff] }
  0x59   :  { %880 = vmatprep.subr.bf16.mxu0 %v879_v55  ;;  %v885_v13 = vpack.c.bf16 %v131_v11, %v130_v10  ;;  %v179_v14 = vld [vmem:[#allocation5 + $0x1c8] sm:$0xff]  ;;  %v162_v15 = vld [vmem:[#allocation5 + $0x140] sm:$0xff]  ;;  %v149_v20 = vld [vmem:[#allocation5 + $0xd8] sm:$0xff] }
  0x5a   :  { %910 = vmatpush3.bf16.msra.mxu1 %v909_v52  ;;  %v163_v16 = vld [vmem:[#allocation5 + $0x148] sm:$0xff]  ;;  %v915_v17 = vpack.c.bf16 %v179_v14, %v178_v12  ;;  %v887_v21 = vpack.c.bf16 %v149_v20, %v148_v19  ;;  %v132_v22 = vld [vmem:[#allocation5 + $0x50] sm:$0xff]  ;;  %v133_v23 = vld [vmem:[#allocation5 + $0x58] sm:$0xff] }
  0x5b   :  { %912 = vmatprep.subr.bf16.mxu1 %v911_v63  ;;  %v917_v18 = vpack.c.bf16 %v163_v16, %v162_v15  ;;  %v180_v24 = vld [vmem:[#allocation5 + $0x1d0] sm:$0xff]  ;;  %v889_v25 = vpack.c.bf16 %v133_v23, %v132_v22  ;;  %v181_v26 = vld [vmem:[#allocation5 + $0x1d8] sm:$0xff]  ;;  %v150_v31 = vld [vmem:[#allocation5 + $0xe0] sm:$0xff] }
  0x5c   :  { %882 = vmatpush3.bf16.msra.mxu0 %v881_v59  ;;  %v164_v27 = vld [vmem:[#allocation5 + $0x150] sm:$0xff]  ;;  %v165_v28 = vld [vmem:[#allocation5 + $0x158] sm:$0xff]  ;;  %v919_v29 = vpack.c.bf16 %v181_v26, %v180_v24  ;;  %v151_v32 = vld [vmem:[#allocation5 + $0xe8] sm:$0xff] }
  0x5d   :  { %884 = vmatprep.subr.bf16.mxu0 %v883_v9  ;;  %v921_v30 = vpack.c.bf16 %v165_v28, %v164_v27  ;;  %v134_v33 = vld [vmem:[#allocation5 + $0x60] sm:$0xff]  ;;  %v891_v34 = vpack.c.bf16 %v151_v32, %v150_v31  ;;  %v135_v35 = vld [vmem:[#allocation5 + $0x68] sm:$0xff]  ;;  %v152_v42 = vld [vmem:[#allocation5 + $0xf0] sm:$0xff] }
  0x5e   :  { %914 = vmatpush3.bf16.msra.mxu1 %v913_v5  ;;  %v182_v36 = vld [vmem:[#allocation5 + $0x1e0] sm:$0xff]  ;;  %v183_v37 = vld [vmem:[#allocation5 + $0x1e8] sm:$0xff]  ;;  %v893_v38 = vpack.c.bf16 %v135_v35, %v134_v33  ;;  %v153_v44 = vld [vmem:[#allocation5 + $0xf8] sm:$0xff] }
  0x5f   :  { %916 = vmatprep.subr.bf16.mxu1 %v915_v17  ;;  %v923_v39 = vpack.c.bf16 %v183_v37, %v182_v36  ;;  %v166_v40 = vld [vmem:[#allocation5 + $0x160] sm:$0xff]  ;;  %v167_v41 = vld [vmem:[#allocation5 + $0x168] sm:$0xff]  ;;  %v136_v45 = vld [vmem:[#allocation5 + $0x70] sm:$0xff]  ;;  %v895_v47 = vpack.c.bf16 %v153_v44, %v152_v42 }
  0x60   :  { %886 = vmatpush3.bf16.msra.mxu0 %v885_v13  ;;  %v925_v43 = vpack.c.bf16 %v167_v41, %v166_v40  ;;  %v137_v46 = vld [vmem:[#allocation5 + $0x78] sm:$0xff]  ;;  %v184_v48 = vld [vmem:[#allocation5 + $0x1f0] sm:$0xff]  ;;  %v202_v55 = vld [vmem:[#allocation5 + $0x280] sm:$0xff] }
  0x61   :  { %888 = vmatprep.subr.bf16.mxu0 %v887_v21  ;;  %v185_v49 = vld [vmem:[#allocation5 + $0x1f8] sm:$0xff]  ;;  %v168_v50 = vld [vmem:[#allocation5 + $0x170] sm:$0xff]  ;;  %v897_v51 = vpack.c.bf16 %v137_v46, %v136_v45  ;;  %v203_v56 = vld [vmem:[#allocation5 + $0x288] sm:$0xff] }
  0x62   :  { %918 = vmatpush3.bf16.msra.mxu1 %v917_v18  ;;  %v927_v52 = vpack.c.bf16 %v185_v49, %v184_v48  ;;  %v169_v53 = vld [vmem:[#allocation5 + $0x178] sm:$0xff]  ;;  %v931_v57 = vpack.c.bf16 %v203_v56, %v202_v55  ;;  %v186_v60 = vld [vmem:[#allocation5 + $0x200] sm:$0xff]  ;;  %v187_v61 = vld [vmem:[#allocation5 + $0x208] sm:$0xff] }
  0x63   :  { %920 = vmatprep.subr.bf16.mxu1 %v919_v29  ;;  %v929_v54 = vpack.c.bf16 %v169_v53, %v168_v50  ;;  %v204_v62 = vld [vmem:[#allocation5 + $0x290] sm:$0xff]  ;;  %v205_v63 = vld [vmem:[#allocation5 + $0x298] sm:$0xff]  ;;  %v933_v6 = vpack.c.bf16 %v187_v61, %v186_v60  ;;  %v210_v23 = vld [vmem:[#allocation5 + $0x2c0] sm:$0xff] }
  0x64   :  { %890 = vmatpush3.bf16.msra.mxu0 %v889_v25  ;;  %v935_v13 = vpack.c.bf16 %v205_v63, %v204_v62  ;;  %v188_v14 = vld [vmem:[#allocation5 + $0x210] sm:$0xff]  ;;  %v189_v15 = vld [vmem:[#allocation5 + $0x218] sm:$0xff]  ;;  %v211_v24 = vld [vmem:[#allocation5 + $0x2c8] sm:$0xff] }
  0x65   :  { %892 = vmatprep.subr.bf16.mxu0 %v891_v34  ;;  %v208_v17 = vld [vmem:[#allocation5 + $0x2b0] sm:$0xff]  ;;  %v209_v18 = vld [vmem:[#allocation5 + $0x2b8] sm:$0xff]  ;;  %v947_v26 = vpack.c.bf16 %v211_v24, %v210_v23  ;;  %v194_v27 = vld [vmem:[#allocation5 + $0x240] sm:$0xff] }
  0x66   :  { %922 = vmatpush3.bf16.msra.mxu1 %v921_v30  ;;  %v943_v20 = vpack.c.bf16 %v209_v18, %v208_v17  ;;  %v192_v21 = vld [vmem:[#allocation5 + $0x230] sm:$0xff]  ;;  %v193_v22 = vld [vmem:[#allocation5 + $0x238] sm:$0xff]  ;;  %v195_v28 = vld [vmem:[#allocation5 + $0x248] sm:$0xff] }
  0x67   :  { %924 = vmatprep.subr.bf16.mxu1 %v923_v39  ;;  %v945_v25 = vpack.c.bf16 %v193_v22, %v192_v21  ;;  %v212_v29 = vld [vmem:[#allocation5 + $0x2d0] sm:$0xff]  ;;  %v213_v30 = vld [vmem:[#allocation5 + $0x2d8] sm:$0xff]  ;;  %v949_v31 = vpack.c.bf16 %v195_v28, %v194_v27  ;;  %v214_v35 = vld [vmem:[#allocation5 + $0x2e0] sm:$0xff] }
  0x68   :  { %894 = vmatpush3.bf16.msra.mxu0 %v893_v38  ;;  %v951_v32 = vpack.c.bf16 %v213_v30, %v212_v29  ;;  %v196_v33 = vld [vmem:[#allocation5 + $0x250] sm:$0xff]  ;;  %v197_v34 = vld [vmem:[#allocation5 + $0x258] sm:$0xff]  ;;  %v215_v36 = vld [vmem:[#allocation5 + $0x2e8] sm:$0xff] }
  0x69   :  { %896 = vmatprep.subr.bf16.mxu0 %v895_v47  ;;  %v953_v37 = vpack.c.bf16 %v197_v34, %v196_v33  ;;  %v955_v38 = vpack.c.bf16 %v215_v36, %v214_v35  ;;  %v198_v39 = vld [vmem:[#allocation5 + $0x260] sm:$0xff]  ;;  %v199_v40 = vld [vmem:[#allocation5 + $0x268] sm:$0xff]  ;;  %v216_v41 = vld [vmem:[#allocation5 + $0x2f0] sm:$0xff] }
  0x6a   :  { %926 = vmatpush3.bf16.msra.mxu1 %v925_v43  ;;  %v217_v42 = vld [vmem:[#allocation5 + $0x2f8] sm:$0xff]  ;;  %v957_v43 = vpack.c.bf16 %v199_v40, %v198_v39  ;;  %v200_v45 = vld [vmem:[#allocation5 + $0x270] sm:$0xff]  ;;  %v435_v48 = vld [vmem:[#allocation7] sm:$0xff] }
  0x6b   :  { %928 = vmatprep.subr.bf16.mxu1 %v927_v52  ;;  %v959_v44 = vpack.c.bf16 %v217_v42, %v216_v41  ;;  %v201_v46 = vld [vmem:[#allocation5 + $0x278] sm:$0xff]  ;;  %v436_v49 = vld [vmem:[#allocation7 + $0x8] sm:$0xff]  ;;  %v437_v52 = vld [vmem:[#allocation7 + $0x10] sm:$0xff] }
  0x6c   :  { %898 = vmatpush3.bf16.msra.mxu0 %v897_v51  ;;  %v961_v47 = vpack.c.bf16 %v201_v46, %v200_v45  ;;  %v964_v50 = vpack.c.bf16 %v436_v49, %v435_v48  ;;  %v1172_v51 = vmov 0.0|0.0   ;;  %v438_v53 = vld [vmem:[#allocation7 + $0x18] sm:$0xff]  ;;  %v439_v55 = vld [vmem:[#allocation7 + $0x20] sm:$0xff]  ;;  %v440_v56 = vld [vmem:[#allocation7 + $0x28] sm:$0xff] }
  0x6d   :  { %932 = vmatprep.subr.bf16.mxu0 %v931_v57  ;;  %v970_v57 = vpack.c.bf16 %v440_v56, %v439_v55  ;;  %v443_v61 = vld [vmem:[#allocation7 + $0x40] sm:$0xff]  ;;  %v444_v62 = vld [vmem:[#allocation7 + $0x48] sm:$0xff]  ;;  %v655_v33 = vld [vmem:[%s1364_s2] ss:$0 sm:$0xff]  ;;  %s1175_s2 = smov [#allocation10]  }
  0x6e   :  { %930 = vmatpush3.bf16.msra.mxu1 %v929_v54  ;;  %v967_v54 = vpack.c.bf16 %v438_v53, %v437_v52  ;;  %v976_v63 = vpack.c.bf16 %v444_v62, %v443_v61  ;;  %v534_v17 = vld [vmem:[#allocation8 + $0x28] sm:$0xff]  ;;  %v537_v22 = vld [vmem:[#allocation8 + $0x40] sm:$0xff]  ;;  %v544_v45 = vld [vmem:[#allocation8 + $0x78] sm:$0xff]  ;;  %s630_s10 = sshll.u32 %s1175_s2, 4  ;;  %s631_s10 = int_to_ptr.vmem [resolvable:$true] %s630_s10 }
  0x6f   :  { %963 = vmatprep.subr.bf16.mxu1 %v1172_v51  ;;  %v538_v23 = vld [vmem:[#allocation8 + $0x48] sm:$0xff]  ;;  %v541_v28 = vld [vmem:[#allocation8 + $0x60] sm:$0xff]  ;;  %s1112_s11 = scalar_lea.vmem %s631_s10, 768  ;;  %p1117_p5 = scmp.lt.s32.totalorder %s631_s10, %s631_s10 }
  0x70   :  { %v1000_v24 = vpack.c.bf16 %v538_v23, %v537_v22  ;;  %v542_v29 = vld [vmem:[#allocation8 + $0x68] sm:$0xff]  ;;  %p1113_p4 = scmp.ne.s32.totalorder %s631_s10, %s1112_s11  ;;  %p1118_p6 = scmp.lt.s32.totalorder %s1112_s11, %s1112_s11 }
  0x71   :  { %v1006_v30 = vpack.c.bf16 %v542_v29, %v541_v28 }
  0x72   :  { %p1119_p7 = por %p1118_p6, %p1117_p5 }
  0x74   :  { %p1120_p8 = pnand %p1119_p7, %p1113_p4 }
  0xe4   :  { %v101_v58 = vpop.xlane.xlu0 %100 }
  0xe5   :  { %v102_v59 = vmax.f32 %v101_v58, 1e-24  ;;  %v441_v58 = vld [vmem:[#allocation7 + $0x30] sm:$0xff] }
  0xe7   :  { %1022 = vrsqrt.f32 %v102_v59  ;;  %v442_v59 = vld [vmem:[#allocation7 + $0x38] sm:$0xff] }
  0xe8   :  { %v973_v60 = vpack.c.bf16 %v442_v59, %v441_v58 }
  0xf1   :  { %v1023_v5 = vpop.eup %1022 }
  0xf2   :  { %v105_v7 = vmul.f32 %v1023_v5, %v1281_v1  ;;  %v107_v9 = vmul.f32 %v1023_v5, %v1285_v3  ;;  %v104_v10 = vmul.f32 %v1023_v5, %v1279_v0  ;;  %v106_v11 = vmul.f32 %v1023_v5, %v1283_v2  ;;  %v206_v1 = vld [vmem:[#allocation5 + $0x2a0] sm:$0xff]  ;;  %v207_v3 = vld [vmem:[#allocation5 + $0x2a8] sm:$0xff] }
  0xf3   :  { %v109_v12 = vmul.f32 %v1023_v5, %v1295_v8  ;;  %v1309_v16 = vmul.f32 %v1023_v5, %v1287_v4  ;;  %v937_v0 = vpack.c.bf16 %v189_v15, %v188_v14  ;;  %v939_v2 = vpack.c.bf16 %v207_v3, %v206_v1  ;;  %v190_v4 = vld [vmem:[#allocation5 + $0x220] sm:$0xff]  ;;  %v191_v8 = vld [vmem:[#allocation5 + $0x228] sm:$0xff]  ;;  %v445_v5 = vld [vmem:[#allocation7 + $0x50] sm:$0xff] }
  0xf4   :  { %111 = vst [vmem:[#allocation10 + $0x8] sm:$0xff] %v105_v7  ;;  %289 = vmatprep.mubr.f32.mxu0 %v105_v7  ;;  %113 = vst [vmem:[#allocation10 + $0x18] sm:$0xff] %v107_v9  ;;  %359 = vmatprep.mubr.f32.mxu1 %v107_v9  ;;  %v941_v19 = vpack.c.bf16 %v191_v8, %v190_v4  ;;  %v447_v9 = vld [vmem:[#allocation7 + $0x60] sm:$0xff]  ;;  %v1174_v15 = vmov 0.0   ;;  %v530_v1 = vld [vmem:[#allocation8 + $0x8] sm:$0xff] }
  0xf5   :  { %110 = vst [vmem:[#allocation10] sm:$0xff] %v104_v10  ;;  %112 = vst [vmem:[#allocation10 + $0x10] sm:$0xff] %v106_v11  ;;  %290 = vmatmul.mubr.f32.vlgmr.msra.gmra.mrb[0].mxu0 %v104_v10  ;;  %360 = vmatmul.mubr.f32.vlgmr.msra.gmra.mrb[0].mxu1 %v106_v11  ;;  %v448_v10 = vld [vmem:[#allocation7 + $0x68] sm:$0xff]  ;;  %v531_v3 = vld [vmem:[#allocation8 + $0x10] sm:$0xff] }
  0xf6   :  { %115 = vst [vmem:[#allocation10 + $0x28] sm:$0xff] %v109_v12  ;;  %114 = vst [vmem:[#allocation10 + $0x20] sm:$0xff] %v1309_v16  ;;  %934 = vmatpush3.bf16.msra.mxu0 %v933_v6  ;;  %429 = vmatprep.mubr.f32.mxu0 %v109_v12  ;;  %v446_v6 = vld [vmem:[#allocation7 + $0x58] sm:$0xff]  ;;  %v982_v11 = vpack.c.bf16 %v448_v10, %v447_v9  ;;  %v449_v12 = vld [vmem:[#allocation7 + $0x70] sm:$0xff] }
  0xf7   :  { %936 = vmatprep.subr.bf16.mxu0 %v935_v13  ;;  %965 = vmatpush3.bf16.msra.mxu1 %v964_v50  ;;  %v979_v7 = vpack.c.bf16 %v446_v6, %v445_v5  ;;  %v450_v13 = vld [vmem:[#allocation7 + $0x78] sm:$0xff]  ;;  %v533_v8 = vld [vmem:[#allocation8 + $0x20] sm:$0xff] }
  0xf8   :  { %966 = vmatprep.subr.bf16.mxu1 %v1172_v51  ;;  %v985_v14 = vpack.c.bf16 %v450_v13, %v449_v12  ;;  %829 = vmatprep.mubr.msk.f32.mxu1 %vm1173_vm0, %v1174_v15  ;;  %v994_v18 = vpack.c.bf16 %v534_v17, %v533_v8 }
  0xfa   :  { %938 = vmatpush3.bf16.msra.mxu0 %v937_v0 }
  0xfb   :  { %940 = vmatprep.subr.bf16.mxu0 %v939_v2  ;;  %968 = vmatpush3.bf16.msra.mxu1 %v967_v54  ;;  %v532_v2 = vld [vmem:[#allocation8 + $0x18] sm:$0xff] }
  0xfc   :  { %969 = vmatprep.subr.bf16.mxu1 %v1172_v51  ;;  %v991_v4 = vpack.c.bf16 %v532_v2, %v531_v3 }
  0xfe   :  { %942 = vmatpush3.bf16.msra.mxu0 %v941_v19  ;;  %v535_v19 = vld [vmem:[#allocation8 + $0x30] sm:$0xff] }
  0xff   :  { %944 = vmatprep.subr.bf16.mxu0 %v943_v20  ;;  %971 = vmatpush3.bf16.msra.mxu1 %v970_v57  ;;  %v536_v20 = vld [vmem:[#allocation8 + $0x38] sm:$0xff] }
 0x100   :  { %972 = vmatprep.subr.bf16.mxu1 %v1172_v51  ;;  %v997_v21 = vpack.c.bf16 %v536_v20, %v535_v19 }
 0x102   :  { %946 = vmatpush3.bf16.msra.mxu0 %v945_v25  ;;  %v539_v25 = vld [vmem:[#allocation8 + $0x50] sm:$0xff] }
 0x103   :  { %948 = vmatprep.subr.bf16.mxu0 %v947_v26  ;;  %974 = vmatpush3.bf16.msra.mxu1 %v973_v60  ;;  %v540_v26 = vld [vmem:[#allocation8 + $0x58] sm:$0xff] }
 0x104   :  { %975 = vmatprep.subr.bf16.mxu1 %v1172_v51  ;;  %v1003_v27 = vpack.c.bf16 %v540_v26, %v539_v25 }
 0x106   :  { %950 = vmatpush3.bf16.msra.mxu0 %v949_v31 }
 0x107   :  { %952 = vmatprep.subr.bf16.mxu0 %v951_v32  ;;  %977 = vmatpush3.bf16.msra.mxu1 %v976_v63 }
 0x108   :  { %978 = vmatprep.subr.bf16.mxu1 %v1172_v51 }
 0x10a   :  { %954 = vmatpush3.bf16.msra.mxu0 %v953_v37 }
 0x10b   :  { %956 = vmatprep.subr.bf16.mxu0 %v955_v38  ;;  %980 = vmatpush3.bf16.msra.mxu1 %v979_v7 }
 0x10c   :  { %981 = vmatprep.subr.bf16.mxu1 %v1172_v51 }
 0x10e   :  { %958 = vmatpush3.bf16.msra.mxu0 %v957_v43 }
 0x10f   :  { %960 = vmatprep.subr.bf16.mxu0 %v959_v44  ;;  %983 = vmatpush3.bf16.msra.mxu1 %v982_v11  ;;  %v543_v44 = vld [vmem:[#allocation8 + $0x70] sm:$0xff] }
 0x110   :  { %984 = vmatprep.subr.bf16.mxu1 %v1172_v51  ;;  %v1009_v46 = vpack.c.bf16 %v544_v45, %v543_v44 }
 0x112   :  { %962 = vmatpush3.bf16.msra.mxu0 %v961_v47  ;;  %v656_v47 = vld [vmem:[%s1366_s4] ss:$0 sm:$0xff] }
 0x113   :  { %987 = vmatprep.subr.bf16.mxu0 %v1172_v51  ;;  %986 = vmatpush3.bf16.msra.mxu1 %v985_v14 }
 0x115   :  { %430 = vmatmul.mubr.f32.vlgmr.msra.gmra.mrb[2].mxu0 %v1309_v16  ;;  %v529_v16 = vld [vmem:[#allocation8] sm:$0xff] }
 0x116   :  { %864 = vmatprep.mubr.msk.f32.mxu0 %vm1173_vm0, %v1174_v15  ;;  %v988_v0 = vpack.c.bf16 %v530_v1, %v529_v16 }
 0x118   :  { %989 = vmatpush3.bf16.msra.mxu0 %v988_v0 }
 0x119   :  { %990 = vmatprep.subr.bf16.mxu0 %v1172_v51 }
 0x11c   :  { %992 = vmatpush3.bf16.msra.mxu0 %v991_v4 }
 0x11d   :  { %993 = vmatprep.subr.bf16.mxu0 %v1172_v51 }
 0x120   :  { %995 = vmatpush3.bf16.msra.mxu0 %v994_v18 }
 0x121   :  { %996 = vmatprep.subr.bf16.mxu0 %v1172_v51 }
 0x124   :  { %998 = vmatpush3.bf16.msra.mxu0 %v997_v21 }
 0x125   :  { %999 = vmatprep.subr.bf16.mxu0 %v1172_v51 }
 0x128   :  { %1001 = vmatpush3.bf16.msra.mxu0 %v1000_v24 }
 0x129   :  { %1002 = vmatprep.subr.bf16.mxu0 %v1172_v51 }
 0x12c   :  { %1004 = vmatpush3.bf16.msra.mxu0 %v1003_v27 }
 0x12d   :  { %1005 = vmatprep.subr.bf16.mxu0 %v1172_v51 }
 0x130   :  { %1007 = vmatpush3.bf16.msra.mxu0 %v1006_v30 }
 0x131   :  { %1008 = vmatprep.subr.bf16.mxu0 %v1172_v51 }
 0x134   :  { %1010 = vmatpush3.bf16.msra.mxu0 %v1009_v46 }
 0x1c8   :  { %v690_v31 = vpop.f32.mrb[0].mxu0  ;;  %v725_v32 = vpop.f32.mrb[0].mxu1 }
 0x1c9   :  { %v691_v34 = vpop.f32.mrb[1].mxu0  ;;  %v726_v35 = vpop.f32.mrb[1].mxu1 }
 0x1ca   :  { %v692_v36 = vadd.f32 %v691_v34, %v690_v31  ;;  %v727_v37 = vadd.f32 %v726_v35, %v725_v32 }
 0x1cc   :  { %v292_v38 = vadd.f32 %v692_v36, %v655_v33 }
 0x1ce   :  { %v362_v39 = vadd.f32 %v727_v37, %v292_v38 }
 0x1e8   :  { %v760_v40 = vpop.f32.mrb[2].mxu0 }
 0x1e9   :  { %v761_v41 = vpop.f32.mrb[3].mxu0 }
 0x1ea   :  { %v762_v42 = vadd.f32 %v761_v41, %v760_v40 }
 0x1ec   :  { %v432_v43 = vadd.f32 %v762_v42, %v362_v39 }
 0x1ee   :  { %830 = vmatmul.mubr.f32.vlgmr.msra.gmra.mrb[2].mxu1 %v432_v43 }
 0x2c1   :  { %v524_v48 = vpop.f32.mrb[2].mxu1 }
 0x2c2   :  { %v525_v49 = vadd.f32 %v656_v47, %v524_v48  ;;  %v831_v50 = vpop.f32.mrb[3].mxu1 }
 0x2c4   :  { %v528_v51 = vmax.f32 %v525_v49, 0.0 }
 0x2c6   :  { %865 = vmatmul.mubr.f32.vlgmr.msra.gmra.mrb[4].mxu0 %v528_v51 }
 0x2c7   :  { %1123 = shalt.err (!%p1120_p8)
}
 0x2c8   :  { %s1124_s14 = scalar_lea.hbm %s1369_s7, 768 }
 0x2c9   :  { %p1125_p9 = scmp.ne.s32.totalorder %s1369_s7, %s1124_s14  ;;  %p1128_p10 = scmp.lt.u32.totalorder %s1124_s14, %s1369_s7 }
 0x2cb   :  { %p1130_p11 = pnand %p1128_p10, %p1125_p9 }
 0x2cd   :  { %1133 = shalt.err (!%p1130_p11)
}
 0x2ce   :  { %633 = dma.vmem_to_hbm [thread:$0]  %s631_s10, 768, %s1369_s7, [#allocation4]   ;;  %v657_v52 = vld [vmem:[%s1368_s6] ss:$0 sm:$0xff] }
 0x2cf   :  { %s1176_s24 = smov [#allocation11]  }
 0x2d0   :  { %s640_s25 = sshll.u32 %s1176_s24, 4  ;;  %s641_s25 = int_to_ptr.vmem [resolvable:$true] %s640_s25 }
 0x2d1   :  { %s1134_s26 = scalar_lea.vmem %s641_s25, 128  ;;  %p1139_p13 = scmp.lt.s32.totalorder %s641_s25, %s641_s25 }
 0x2d2   :  { %p1135_p12 = scmp.ne.s32.totalorder %s641_s25, %s1134_s26  ;;  %p1140_p0 = scmp.lt.s32.totalorder %s1134_s26, %s1134_s26 }
 0x2d4   :  { %p1141_p1 = por %p1140_p0, %p1139_p13 }
 0x2d6   :  { %p1142_p2 = pnand %p1141_p1, %p1135_p12 }
 0x399   :  { %v618_v53 = vpop.f32.mrb[4].mxu0 }
 0x39a   :  { %v619_v54 = vadd.f32 %v657_v52, %v618_v53  ;;  %v866_v55 = vpop.f32.mrb[5].mxu0 }
 0x39c   :  { %v622_v56 = vadd.f32 %v619_v54, %v432_v43 }
 0x39e   :  { %623 = vst [vmem:[#allocation11] sm:$0xff] %v622_v56 }
 0x39f   :  { %1145 = shalt.err (!%p1142_p2)
}
 0x3a0   :  { %s1146_s29 = scalar_lea.hbm %s1370_s8, 128 }
 0x3a1   :  { %p1147_p3 = scmp.ne.s32.totalorder %s1370_s8, %s1146_s29  ;;  %p1150_p4 = scmp.lt.u32.totalorder %s1146_s29, %s1370_s8 }
 0x3a3   :  { %p1152_p5 = pnand %p1150_p4, %p1147_p3 }
 0x3a5   :  { %1155 = shalt.err (!%p1152_p5)
}
 0x3a6   :  { %643 = dma.vmem_to_hbm [thread:$0]  %s641_s25, 128, %s1370_s8, [#allocation12]  }
 0x3a7   :  { %1162 = dma.done.wait [#allocation4], 768  }
 0x3a8   :  { %1163 = vsyncadd [#allocation4], 4294966528 }
 0x3a9   :  { %1164 = dma.done.wait [#allocation12], 128  }
 0x3aa   :  { %1165 = vsyncadd [#allocation12], 4294967168 }
 0x3ab   :  { %650 = vsyncpa [#allocation3], 1 }
 0x3ac   :  { %651 = vsyncpa [#allocation6], 1 }
 0x3ad   :  { %652 = vsyncpa [#allocation9], 1 }
 0x3ae   :  { %653 = vsyncpa [#allocation4], 1 }
 0x3af   :  { %654 = vsyncpa [#allocation12], 1 }

</bundles_post_ra>
